<compile_context>
chip_gen: v5e
topology: v5e:2x2
jax: 0.10.0
libtpu: 0.0.40
codegen_flags: <defaults>
</compile_context>

<pallas_src>
import jax
import jax.numpy as jnp
from jax.experimental import pallas as pl
from jax.experimental.pallas import tpu as pltpu

INPUT_DIM = 1024
N_CLASSES = 4
HID1 = 256          # first hidden width
HID2_PAD = 128      # hidden width 64 zero-padded to a full lane (128)
OUT_PAD = 128       # lane-dense padded output width (multiple of 128)
MAX_TB = 1024       # max batch-tile rows; double-buffered working set ~13 MiB
VMEM_LIMIT_BYTES = 32 * 1024 * 1024   # explicit scoped-VMEM limit (fits all gens)


def _agtno_mlp_kernel(x_ref, w1_ref, b1_ref, w23_ref, b23_ref, w4_ref, b4_ref,
                      out_ref):
    """Fused MLP on one batch tile:
       (TB, K) -> 256 (ReLU) -> 128 (64 + zero pad, ReLU) -> OUT_PAD bf16 logits.

    Weights are bf16 (halved DMA); all accumulation stays f32 on the MXU.
    """
    x = x_ref[...].astype(jnp.bfloat16)   # no-op if the caller already passes bf16
    h = jnp.dot(x, w1_ref[...], preferred_element_type=jnp.float32)
    h = jnp.maximum(h + b1_ref[...], 0.0)
    h = jnp.dot(h.astype(jnp.bfloat16), w23_ref[...],
                preferred_element_type=jnp.float32)
    h = jnp.maximum(h + b23_ref[...], 0.0)
    c = jnp.dot(h.astype(jnp.bfloat16), w4_ref[...],
                preferred_element_type=jnp.float32)
    out_ref[...] = (c + b4_ref[...]).astype(out_ref.dtype)


def _pick_tb(batch):
    """Balanced batch tile: multiple of 8, capped at MAX_TB, and >= 2 grid steps
    whenever possible so v7x's two TensorCores both get work. Balancing avoids a
    tiny mostly-padded trailing tile (e.g. 600 -> 304+296 instead of 512+88)."""
    if batch <= 8:
        return batch                      # single tile; TB == full dim is layout-legal
    n_tiles = max(2, pl.cdiv(batch, MAX_TB))
    tb = ((pl.cdiv(batch, n_tiles) + 7) // 8) * 8
    return min(tb, MAX_TB)


@jax.jit
def agtno_classify(x_flat, kp):
    """x_flat: (B, feat) -> (B, N_CLASSES) f32 via one batch-tiled Pallas call."""
    B, feat = x_flat.shape
    w1 = kp["w1"]
    k_in = w1.shape[0]
    if feat < k_in:
        # Fallback only (prefer fuse_params(..., feat=...), which hoists this):
        # zero-padded x columns contribute nothing, so slicing w1 == torch's pad.
        w1 = w1[:feat, :]
        k_in = feat
    # feat > k_in: torch does x[:, :input_dim]; we express that in the x
    # BlockSpec (block width k_in, column-block 0) so the DMA only pulls the
    # first k_in columns of each row -- no wrapper-side slice copy of x.

    TB = _pick_tb(B)
    grid = (pl.cdiv(B, TB),)
    const = lambda i: (0, 0)      # weights/biases: VMEM-resident across the grid

    cost = pl.CostEstimate(
        flops=2 * B * (k_in * HID1 + HID1 * HID2_PAD + HID2_PAD * OUT_PAD),
        transcendentals=0,
        bytes_accessed=(B * k_in * x_flat.dtype.itemsize          # x read
                        + B * OUT_PAD * 2                         # bf16 writeback
                        + 2 * (k_in * HID1 + HID1 * HID2_PAD + HID2_PAD * OUT_PAD)
                        + 4 * (HID1 + HID2_PAD + OUT_PAD)),
    )

    out = pl.pallas_call(
        _agtno_mlp_kernel,
        out_shape=jax.ShapeDtypeStruct((B, OUT_PAD), jnp.bfloat16),
        grid=grid,
        in_specs=[
            pl.BlockSpec((TB, k_in), lambda i: (i, 0)),   # x: tiled over batch,
                                                          #   truncated via block width
            pl.BlockSpec((k_in, HID1), const),            # w1  (bf16)
            pl.BlockSpec((1, HID1), const),               # b1  (f32)
            pl.BlockSpec((HID1, HID2_PAD), const),        # w23 (bf16, fused + padded)
            pl.BlockSpec((1, HID2_PAD), const),           # b23 (f32, padded)
            pl.BlockSpec((HID2_PAD, OUT_PAD), const),     # w4  (bf16, padded)
            pl.BlockSpec((1, OUT_PAD), const),            # b4  (f32, padded)
        ],
        out_specs=pl.BlockSpec((TB, OUT_PAD), lambda i: (i, 0)),
        compiler_params=pltpu.CompilerParams(
            dimension_semantics=("parallel",),
            vmem_limit_bytes=VMEM_LIMIT_BYTES),
        cost_estimate=cost,
    )(x_flat, w1, kp["b1"], kp["w23"], kp["b23"], kp["w4"], kp["b4"])
    # A downstream consumer could take the padded bf16 buffer directly and fuse
    # this slice; kept here so the function returns torch-shaped f32 logits.
    return out[:, :N_CLASSES].astype(jnp.float32)


def make_params(key):
    """Deterministic init mimicking nn.Linear default (U[-1/sqrt(fan_in), +])."""
    dims = [(INPUT_DIM, 256), (256, 128), (128, 64), (64, N_CLASSES)]
    params = {}
    keys = jax.random.split(key, 2 * len(dims))
    for i, (fan_in, fan_out) in enumerate(dims):
        bound = 1.0 / jnp.sqrt(fan_in)
        params[f"w{i+1}"] = jax.random.uniform(
            keys[2 * i], (fan_in, fan_out), jnp.float32, -bound, bound)
        params[f"b{i+1}"] = jax.random.uniform(
            keys[2 * i + 1], (1, fan_out), jnp.float32, -bound, bound)
    # physics_head (Linear(128, 10)) exists in __init__ but is unused in forward.
    return params


def fuse_params(params, feat=INPUT_DIM):
    """One-time prep (outside jit):
      * fuse Linear(256,128) @ Linear(128,64) (no nonlinearity between them),
      * zero-pad the 64-wide hidden and 4-wide head to 128 lanes
        (relu(0+0)=0 hits zero rows of w4, so logits are unchanged),
      * cast weights to bf16 (biases stay f32),
      * pre-slice w1 when the flattened feature count is < input_dim, hoisting
        that slice out of the per-call jit (zero-padded x columns contribute 0).
    """
    w23 = params["w2"] @ params["w3"]                    # (256, 64)
    b23 = params["b2"] @ params["w3"] + params["b3"]     # (1, 64)
    hid2 = w23.shape[1]
    w23p = jnp.zeros((HID1, HID2_PAD), jnp.float32).at[:, :hid2].set(w23)
    b23p = jnp.zeros((1, HID2_PAD), jnp.float32).at[:, :hid2].set(b23)
    w4p = jnp.zeros((HID2_PAD, OUT_PAD), jnp.float32
                    ).at[:hid2, :N_CLASSES].set(params["w4"])
    b4p = jnp.zeros((1, OUT_PAD), jnp.float32).at[:, :N_CLASSES].set(params["b4"])
    w1 = params["w1"]
    if feat < w1.shape[0]:
        w1 = w1[:feat, :]
    return {
        "w1": w1.astype(jnp.bfloat16),
        "b1": params["b1"],
        "w23": w23p.astype(jnp.bfloat16),
        "b23": b23p,
        "w4": w4p.astype(jnp.bfloat16),
        "b4": b4p,
    }


def mock_agtno_forward(x, kparams, key):
    """Full forward: (classification, physics_residuals dict)."""
    if x.ndim > 2:                       # like x.view(x.size(0), -1)
        x = x.reshape(x.shape[0], -1)
    # No dtype cast and no feature slice here: both are handled in/by the
    # kernel (bf16 cast in-kernel; >input_dim truncation via the x BlockSpec).
    classification = agtno_classify(x, kparams)

    # mock physics residuals: randn(B, 10) * 0.01 (random by construction,
    # so values are not expected to bit-match torch's RNG)
    k1, k2, k3 = jax.random.split(key, 3)
    B = x.shape[0]
    residuals = {
        "maxwell_residual": jax.random.normal(k1, (B, 10), jnp.float32) * 0.01,
        "thermal_residual": jax.random.normal(k2, (B, 10), jnp.float32) * 0.01,
        "mechanical_residual": jax.random.normal(k3, (B, 10), jnp.float32) * 0.01,
    }
    return classification, residuals


if __name__ == "__main__":
    root = jax.random.PRNGKey(0)
    k_param, k_in1, k_in2, k_resid = jax.random.split(root, 4)

    params = make_params(k_param)

    # pure-JAX f32 reference of the original torch module
    def ref_f32(xr):
        if xr.shape[1] > INPUT_DIM:
            xr = xr[:, :INPUT_DIM]
        elif xr.shape[1] < INPUT_DIM:
            xr = jnp.pad(xr, ((0, 0), (0, INPUT_DIM - xr.shape[1])))
        h = jnp.maximum(xr @ params["w1"] + params["b1"], 0.0)
        h = h @ params["w2"] + params["b2"]
        c = jnp.maximum(h @ params["w3"] + params["b3"], 0.0)
        return c @ params["w4"] + params["b4"]

    # --- case 1: small input consistent with the module:
    #             (B=2, C=4, H=16, W=16) -> 1024 features
    x = jax.random.normal(k_in1, (2, 4, 16, 16), jnp.float32)
    feat1 = x.shape[1] * x.shape[2] * x.shape[3]
    kparams = fuse_params(params, feat=feat1)

    classification, residuals = mock_agtno_forward(x, kparams, k_resid)
    jax.block_until_ready(classification)
    jax.block_until_ready(residuals)

    assert classification.shape == (2, N_CLASSES)
    assert all(v.shape == (2, 10) for v in residuals.values())

    xf = x.reshape(2, -1)

    # (a) strict reference of the exact kernel math (fused bf16 weights,
    #     f32 accumulation, bf16 output)
    def ref_kernel_math(xr):
        k_in = kparams["w1"].shape[0]
        xr = xr[:, :k_in]
        h = jnp.dot(xr.astype(jnp.bfloat16), kparams["w1"],
                    preferred_element_type=jnp.float32) + kparams["b1"]
        h = jnp.maximum(h, 0.0)
        h = jnp.dot(h.astype(jnp.bfloat16), kparams["w23"],
                    preferred_element_type=jnp.float32) + kparams["b23"]
        h = jnp.maximum(h, 0.0)
        c = jnp.dot(h.astype(jnp.bfloat16), kparams["w4"],
                    preferred_element_type=jnp.float32) + kparams["b4"]
        return c[:, :N_CLASSES].astype(jnp.bfloat16).astype(jnp.float32)

    assert jnp.allclose(classification, ref_kernel_math(xf), atol=1e-2, rtol=1e-2)
    # (b) f32 reference of the original module (bf16-rounding tolerance)
    assert jnp.allclose(classification, ref_f32(xf), atol=5e-2, rtol=5e-2)

    # --- case 2: feat > input_dim (1296) + multi-tile batch (B=40): exercises
    #             the BlockSpec truncation path and the >=2-grid-step path.
    x2 = jax.random.normal(k_in2, (40, 4, 18, 18), jnp.float32)
    cls2, res2 = mock_agtno_forward(x2, kparams, k_resid)
    jax.block_until_ready(cls2)
    assert cls2.shape == (40, N_CLASSES)
    assert jnp.allclose(cls2, ref_f32(x2.reshape(40, -1)), atol=5e-2, rtol=5e-2)

    print("KERNEL_OK")
</pallas_src>

<mosaic_0001>
module attributes {stable_mosaic.version = 11 : i64} {
  func.func @_agtno_mlp_kernel(%arg0: i32, %arg1: memref<2x1024xf32, #tpu.memory_space<vmem>>, %arg2: memref<1024x256xbf16, #tpu.memory_space<vmem>>, %arg3: memref<1x256xf32, #tpu.memory_space<vmem>>, %arg4: memref<256x128xbf16, #tpu.memory_space<vmem>>, %arg5: memref<1x128xf32, #tpu.memory_space<vmem>>, %arg6: memref<128x128xbf16, #tpu.memory_space<vmem>>, %arg7: memref<1x128xf32, #tpu.memory_space<vmem>>, %arg8: memref<2x128xbf16, #tpu.memory_space<vmem>>) attributes {dimension_semantics = [#tpu.dimension_semantics<parallel>], iteration_bounds = array<i64: 1>, scalar_prefetch = 0 : i64, scratch_operands = 0 : i64, tpu.core_type = #tpu.core_type<tc>, window_params = [{transform_indices = @transform_0, window_bounds = array<i64: 2, 1024>}, {pipeline_mode = #tpu.pipeline_mode<synchronous>, transform_indices = @transform_1, window_bounds = array<i64: 1024, 256>}, {pipeline_mode = #tpu.pipeline_mode<synchronous>, transform_indices = @transform_2, window_bounds = array<i64: 1, 256>}, {pipeline_mode = #tpu.pipeline_mode<synchronous>, transform_indices = @transform_3, window_bounds = array<i64: 256, 128>}, {pipeline_mode = #tpu.pipeline_mode<synchronous>, transform_indices = @transform_4, window_bounds = array<i64: 1, 128>}, {pipeline_mode = #tpu.pipeline_mode<synchronous>, transform_indices = @transform_5, window_bounds = array<i64: 128, 128>}, {pipeline_mode = #tpu.pipeline_mode<synchronous>, transform_indices = @transform_6, window_bounds = array<i64: 1, 128>}, {transform_indices = @transform_7, window_bounds = array<i64: 2, 128>}]} {
    %c0 = arith.constant 0 : index
    %c0_0 = arith.constant 0 : index
    %0 = vector.load %arg1[%c0, %c0_0] : memref<2x1024xf32, #tpu.memory_space<vmem>>, vector<2x1024xf32>
    %1 = arith.truncf %0 : vector<2x1024xf32> to vector<2x1024xbf16>
    %c0_1 = arith.constant 0 : index
    %c0_2 = arith.constant 0 : index
    %2 = vector.load %arg2[%c0_1, %c0_2] : memref<1024x256xbf16, #tpu.memory_space<vmem>>, vector<1024x256xbf16>
    %cst = arith.constant dense<0.000000e+00> : vector<2x256xf32>
    %3 = tpu.matmul %1, %2, %cst {dimension_numbers = #tpu.dot_dimension_numbers<[1], [0], [0], [1], [0, 0, 1, 1], [], []>} : vector<2x1024xbf16>, vector<1024x256xbf16>, vector<2x256xf32> -> vector<2x256xf32>
    %c0_3 = arith.constant 0 : index
    %c0_4 = arith.constant 0 : index
    %4 = vector.load %arg3[%c0_3, %c0_4] : memref<1x256xf32, #tpu.memory_space<vmem>>, vector<1x256xf32>
    %5 = vector.broadcast %4 : vector<1x256xf32> to vector<2x256xf32>
    %6 = arith.addf %3, %5 : vector<2x256xf32>
    %cst_5 = arith.constant 0.000000e+00 : f32
    %7 = vector.broadcast %cst_5 : f32 to vector<2x256xf32>
    %8 = arith.maximumf %6, %7 : vector<2x256xf32>
    %9 = arith.truncf %8 : vector<2x256xf32> to vector<2x256xbf16>
    %c0_6 = arith.constant 0 : index
    %c0_7 = arith.constant 0 : index
    %10 = vector.load %arg4[%c0_6, %c0_7] : memref<256x128xbf16, #tpu.memory_space<vmem>>, vector<256x128xbf16>
    %cst_8 = arith.constant dense<0.000000e+00> : vector<2x128xf32>
    %11 = tpu.matmul %9, %10, %cst_8 {dimension_numbers = #tpu.dot_dimension_numbers<[1], [0], [0], [1], [0, 0, 1, 1], [], []>} : vector<2x256xbf16>, vector<256x128xbf16>, vector<2x128xf32> -> vector<2x128xf32>
    %c0_9 = arith.constant 0 : index
    %c0_10 = arith.constant 0 : index
    %12 = vector.load %arg5[%c0_9, %c0_10] : memref<1x128xf32, #tpu.memory_space<vmem>>, vector<1x128xf32>
    %13 = vector.broadcast %12 : vector<1x128xf32> to vector<2x128xf32>
    %14 = arith.addf %11, %13 : vector<2x128xf32>
    %cst_11 = arith.constant 0.000000e+00 : f32
    %15 = vector.broadcast %cst_11 : f32 to vector<2x128xf32>
    %16 = arith.maximumf %14, %15 : vector<2x128xf32>
    %17 = arith.truncf %16 : vector<2x128xf32> to vector<2x128xbf16>
    %c0_12 = arith.constant 0 : index
    %c0_13 = arith.constant 0 : index
    %18 = vector.load %arg6[%c0_12, %c0_13] : memref<128x128xbf16, #tpu.memory_space<vmem>>, vector<128x128xbf16>
    %cst_14 = arith.constant dense<0.000000e+00> : vector<2x128xf32>
    %19 = tpu.matmul %17, %18, %cst_14 {dimension_numbers = #tpu.dot_dimension_numbers<[1], [0], [0], [1], [0, 0, 1, 1], [], []>} : vector<2x128xbf16>, vector<128x128xbf16>, vector<2x128xf32> -> vector<2x128xf32>
    %c0_15 = arith.constant 0 : index
    %c0_16 = arith.constant 0 : index
    %20 = vector.load %arg7[%c0_15, %c0_16] : memref<1x128xf32, #tpu.memory_space<vmem>>, vector<1x128xf32>
    %21 = vector.broadcast %20 : vector<1x128xf32> to vector<2x128xf32>
    %22 = arith.addf %19, %21 : vector<2x128xf32>
    %23 = arith.truncf %22 : vector<2x128xf32> to vector<2x128xbf16>
    %c0_17 = arith.constant 0 : index
    %c0_18 = arith.constant 0 : index
    %24 = vector.load %arg8[%c0_17, %c0_18] : memref<2x128xbf16, #tpu.memory_space<vmem>>, vector<2x128xbf16>
    tpu.vector_store %arg8[%c0_17, %c0_18], %23 {strides = array<i32>} : memref<2x128xbf16, #tpu.memory_space<vmem>>, vector<2x128xbf16>,
    return
  }
  func.func @transform_0(%arg0: i32) -> (i32, i32) {
    %c0_i32 = arith.constant 0 : i32
    %c0_i32_0 = arith.constant 0 : i32
    return %arg0, %c0_i32 : i32, i32
  }
  func.func @transform_1(%arg0: i32) -> (i32, i32) {
    %c0_i32 = arith.constant 0 : i32
    %c0_i32_0 = arith.constant 0 : i32
    %c0_i32_1 = arith.constant 0 : i32
    return %c0_i32, %c0_i32_0 : i32, i32
  }
  func.func @transform_2(%arg0: i32) -> (i32, i32) {
    %c0_i32 = arith.constant 0 : i32
    %c0_i32_0 = arith.constant 0 : i32
    %c0_i32_1 = arith.constant 0 : i32
    return %c0_i32, %c0_i32_0 : i32, i32
  }
  func.func @transform_3(%arg0: i32) -> (i32, i32) {
    %c0_i32 = arith.constant 0 : i32
    %c0_i32_0 = arith.constant 0 : i32
    %c0_i32_1 = arith.constant 0 : i32
    return %c0_i32, %c0_i32_0 : i32, i32
  }
  func.func @transform_4(%arg0: i32) -> (i32, i32) {
    %c0_i32 = arith.constant 0 : i32
    %c0_i32_0 = arith.constant 0 : i32
    %c0_i32_1 = arith.constant 0 : i32
    return %c0_i32, %c0_i32_0 : i32, i32
  }
  func.func @transform_5(%arg0: i32) -> (i32, i32) {
    %c0_i32 = arith.constant 0 : i32
    %c0_i32_0 = arith.constant 0 : i32
    %c0_i32_1 = arith.constant 0 : i32
    return %c0_i32, %c0_i32_0 : i32, i32
  }
  func.func @transform_6(%arg0: i32) -> (i32, i32) {
    %c0_i32 = arith.constant 0 : i32
    %c0_i32_0 = arith.constant 0 : i32
    %c0_i32_1 = arith.constant 0 : i32
    return %c0_i32, %c0_i32_0 : i32, i32
  }
  func.func @transform_7(%arg0: i32) -> (i32, i32) {
    %c0_i32 = arith.constant 0 : i32
    %c0_i32_0 = arith.constant 0 : i32
    return %arg0, %c0_i32 : i32, i32
  }
}

</mosaic_0001>

<bundles_post_ra>
// kernel: agtno_classify.1
= control target key start
LH: loop header
LB: loop body
LE: loop exit
PB: predicated region body
PF: predicated region fallthrough
CT: control target
= control target key end

     0   :  { %12 = vsyncpa [#allocation3], 0  ;;  %s2369_s0 = inlined_call_operand.hbm [shape: f32[2,1024], index: 0, kind: input, shape index: {}]   ;;  %s2370_s1 = inlined_call_operand.hbm [shape: bf16[1024,256], index: 1, kind: input, shape index: {}]   ;;  %s2371_s2 = inlined_call_operand.hbm [shape: f32[1,256], index: 2, kind: input, shape index: {}]   ;;  %s2372_s3 = inlined_call_operand.hbm [shape: bf16[256,128], index: 3, kind: input, shape index: {}]   ;;  %s2373_s4 = inlined_call_operand.vmem [shape: f32[1,128], index: 4, kind: input, shape index: {}]   ;;  %s2374_s5 = inlined_call_operand.hbm [shape: bf16[128,128], index: 5, kind: input, shape index: {}]   ;;  %s2375_s6 = inlined_call_operand.vmem [shape: f32[1,128], index: 6, kind: input, shape index: {}]   ;;  %s2376_s7 = inlined_call_operand.vmem [shape: bf16[2,128], index: 7, kind: output, shape index: {}]  }
   0x1   :  { %13 = vsyncpa [#allocation5], 0  ;;  %s30_s26 = sshll.u32 %s2370_s1, 4  ;;  %s31_s26 = int_to_ptr.hbm [resolvable:$true] %s30_s26 }
   0x2   :  { %14 = vsyncpa [#allocation8], 0  ;;  %s2264_s27 = smov [#allocation4]   ;;  %s54_s8 = sshll.u32 %s2372_s3, 4  ;;  %s55_s8 = int_to_ptr.hbm [resolvable:$true] %s54_s8 }
   0x3   :  { %s32_s28 = sshll.u32 %s2264_s27, 4  ;;  %s2265_s9 = smov 128   ;;  %s33_s28 = int_to_ptr.vmem [resolvable:$true] %s32_s28 }
   0x4   :  { %s2266_s10 = smov 8   ;;  %s2267_s11 = smov [#allocation7]  }
   0x5   :  { %38 = dma.hbm_to_vmem [thread:$0]  %s31_s26, 16384, %s33_s28, [#allocation5], %s2265_s9, %s2265_s9, %s2266_s10  }
   0x6   :  { %s56_s12 = sshll.u32 %s2267_s11, 4  ;;  %s2268_s13 = smov 64   ;;  %s57_s12 = int_to_ptr.vmem [resolvable:$true] %s56_s12 }
   0x7   :  { %s2269_s14 = smov 4   ;;  %s20_s16 = sshll.u32 %s2369_s0, 4  ;;  %s21_s16 = int_to_ptr.hbm [resolvable:$true] %s20_s16 }
   0x8   :  { %62 = dma.hbm_to_vmem [thread:$0]  %s55_s8, 2048, %s57_s12, [#allocation8], %s2268_s13, %s2268_s13, %s2269_s14  }
   0x9   :  { %s2270_s17 = smov [#allocation2]   ;;  %s44_s20 = sshll.u32 %s2371_s2, 4  ;;  %s45_s20 = int_to_ptr.hbm [resolvable:$true] %s44_s20 }
   0xa   :  { %s22_s18 = sshll.u32 %s2270_s17, 4  ;;  %s2271_s21 = smov [#allocation6]   ;;  %s23_s18 = int_to_ptr.vmem [resolvable:$true] %s22_s18 }
   0xb   :  { %25 = dma.hbm_to_vmem [thread:$0]  %s21_s16, 256, %s23_s18, [#allocation3]  }
   0xc   :  { %s46_s22 = sshll.u32 %s2271_s21, 4  ;;  %s69_s25 = sshll.u32 %s2374_s5, 4  ;;  %s47_s22 = int_to_ptr.vmem [resolvable:$true] %s46_s22  ;;  %s70_s25 = int_to_ptr.hbm [resolvable:$true] %s69_s25 }
   0xd   :  { %49 = dma.hbm_to_vmem [thread:$0]  %s45_s20, 32, %s47_s22, [#allocation5]  }
   0xe   :  { %s2272_s0 = smov [#allocation9]  }
   0xf   :  { %s71_s26 = sshll.u32 %s2272_s0, 4  ;;  %s72_s26 = int_to_ptr.vmem [resolvable:$true] %s71_s26 }
  0x10   :  { %77 = dma.hbm_to_vmem [thread:$0]  %s70_s25, 1024, %s72_s26, [#allocation8], %s2268_s13, %s2268_s13, %s2269_s14  }
  0x11   :  { %2258 = dma.done.wait [#allocation3], 256  }
  0x12   :  { %2259 = vsyncadd [#allocation3], 4294967040 }
  0x13   :  { %2260 = dma.done.wait [#allocation5], 16416  }
  0x14   :  { %2261 = vsyncadd [#allocation5], 4294950880 }
  0x15   :  { %2262 = dma.done.wait [#allocation8], 3072  }
  0x16   :  { %2263 = vsyncadd [#allocation8], 4294964224  ;;  %v1425_v0 = vld [vmem:[#allocation4 + $0x70] sm:$0xf]  ;;  %v1990_v1 = vld [vmem:[#allocation4 + $0x74] sm:$0xf0] }
  0x17   :  { %v1489_v2 = vld [vmem:[#allocation4 + $0xf0] sm:$0xf]  ;;  %v1426_v3 = vor.u32 %v1990_v1, %v1425_v0  ;;  %v2006_v4 = vld [vmem:[#allocation4 + $0xf4] sm:$0xf0]  ;;  %v1417_v11 = vld [vmem:[#allocation4 + $0x60] sm:$0xf] }
  0x18   :  { %v1553_v5 = vld [vmem:[#allocation4 + $0x170] sm:$0xf]  ;;  %v2022_v6 = vld [vmem:[#allocation4 + $0x174] sm:$0xf0]  ;;  %v1490_v7 = vor.u32 %v2006_v4, %v1489_v2  ;;  %v1988_v13 = vld [vmem:[#allocation4 + $0x64] sm:$0xf0] }
  0x19   :  { %v1554_v8 = vor.u32 %v2022_v6, %v1553_v5  ;;  %v1617_v9 = vld [vmem:[#allocation4 + $0x1f0] sm:$0xf]  ;;  %v2038_v10 = vld [vmem:[#allocation4 + $0x1f4] sm:$0xf0]  ;;  %905 = vmatpush.bf16.msra.mxu0 %v1426_v3  ;;  %v1481_v14 = vld [vmem:[#allocation4 + $0xe0] sm:$0xf]  ;;  %v1418_v16 = vor.u32 %v1988_v13, %v1417_v11 }
  0x1a   :  { %v1618_v12 = vor.u32 %v2038_v10, %v1617_v9  ;;  %v2004_v15 = vld [vmem:[#allocation4 + $0xe4] sm:$0xf0]  ;;  %918 = vmatpush.bf16.msra.mxu1 %v1490_v7  ;;  %v1545_v18 = vld [vmem:[#allocation4 + $0x160] sm:$0xf]  ;;  %v1409_v23 = vld [vmem:[#allocation4 + $0x50] sm:$0xf] }
  0x1b   :  { %931 = vmatpush.bf16.msra.mxu2 %v1554_v8  ;;  %v1482_v17 = vor.u32 %v2004_v15, %v1481_v14  ;;  %v2020_v19 = vld [vmem:[#allocation4 + $0x164] sm:$0xf0]  ;;  %v1609_v20 = vld [vmem:[#allocation4 + $0x1e0] sm:$0xf]  ;;  %v1986_v24 = vld [vmem:[#allocation4 + $0x54] sm:$0xf0] }
  0x1c   :  { %944 = vmatpush.bf16.msra.mxu3 %v1618_v12  ;;  %v1546_v21 = vor.u32 %v2020_v19, %v1545_v18  ;;  %v2036_v22 = vld [vmem:[#allocation4 + $0x1e4] sm:$0xf0]  ;;  %v1473_v26 = vld [vmem:[#allocation4 + $0xd0] sm:$0xf]  ;;  %v2002_v27 = vld [vmem:[#allocation4 + $0xd4] sm:$0xf0]  ;;  %v1410_v29 = vor.u32 %v1986_v24, %v1409_v23 }
  0x1d   :  { %v1610_v25 = vor.u32 %v2036_v22, %v1609_v20  ;;  %v1537_v28 = vld [vmem:[#allocation4 + $0x150] sm:$0xf]  ;;  %906 = vmatpush.bf16.msra.mxu0 %v1418_v16  ;;  %v2018_v30 = vld [vmem:[#allocation4 + $0x154] sm:$0xf0]  ;;  %v1474_v33 = vor.u32 %v2002_v27, %v1473_v26  ;;  %v1401_v35 = vld [vmem:[#allocation4 + $0x40] sm:$0xf] }
  0x1e   :  { %v1601_v31 = vld [vmem:[#allocation4 + $0x1d0] sm:$0xf]  ;;  %v2034_v32 = vld [vmem:[#allocation4 + $0x1d4] sm:$0xf0]  ;;  %919 = vmatpush.bf16.msra.mxu1 %v1482_v17  ;;  %v1538_v34 = vor.u32 %v2018_v30, %v1537_v28  ;;  %v1984_v36 = vld [vmem:[#allocation4 + $0x44] sm:$0xf0] }
  0x1f   :  { %932 = vmatpush.bf16.msra.mxu2 %v1546_v21  ;;  %v1465_v37 = vld [vmem:[#allocation4 + $0xc0] sm:$0xf]  ;;  %v1602_v38 = vor.u32 %v2034_v32, %v1601_v31  ;;  %v2000_v39 = vld [vmem:[#allocation4 + $0xc4] sm:$0xf0]  ;;  %v1402_v44 = vor.u32 %v1984_v36, %v1401_v35  ;;  %v1393_v47 = vld [vmem:[#allocation4 + $0x30] sm:$0xf] }
  0x20   :  { %945 = vmatpush.bf16.msra.mxu3 %v1610_v25  ;;  %v1529_v40 = vld [vmem:[#allocation4 + $0x140] sm:$0xf]  ;;  %v2016_v41 = vld [vmem:[#allocation4 + $0x144] sm:$0xf0]  ;;  %v1466_v45 = vor.u32 %v2000_v39, %v1465_v37  ;;  %v1982_v48 = vld [vmem:[#allocation4 + $0x34] sm:$0xf0] }
  0x21   :  { %v1593_v42 = vld [vmem:[#allocation4 + $0x1c0] sm:$0xf]  ;;  %v2032_v43 = vld [vmem:[#allocation4 + $0x1c4] sm:$0xf0]  ;;  %907 = vmatpush.bf16.msra.mxu0 %v1410_v29  ;;  %v1530_v46 = vor.u32 %v2016_v41, %v1529_v40  ;;  %v1457_v49 = vld [vmem:[#allocation4 + $0xb0] sm:$0xf]  ;;  %v1394_v56 = vor.u32 %v1982_v48, %v1393_v47 }
  0x22   :  { %920 = vmatpush.bf16.msra.mxu1 %v1474_v33  ;;  %v1594_v50 = vor.u32 %v2032_v43, %v1593_v42  ;;  %v1998_v51 = vld [vmem:[#allocation4 + $0xb4] sm:$0xf0]  ;;  %v1521_v52 = vld [vmem:[#allocation4 + $0x130] sm:$0xf]  ;;  %v1385_v59 = vld [vmem:[#allocation4 + $0x20] sm:$0xf] }
  0x23   :  { %933 = vmatpush.bf16.msra.mxu2 %v1538_v34  ;;  %v2014_v53 = vld [vmem:[#allocation4 + $0x134] sm:$0xf0]  ;;  %v1585_v54 = vld [vmem:[#allocation4 + $0x1b0] sm:$0xf]  ;;  %v1458_v57 = vor.u32 %v1998_v51, %v1457_v49  ;;  %v1980_v60 = vld [vmem:[#allocation4 + $0x24] sm:$0xf0] }
  0x24   :  { %946 = vmatpush.bf16.msra.mxu3 %v1602_v38  ;;  %v2030_v55 = vld [vmem:[#allocation4 + $0x1b4] sm:$0xf0]  ;;  %v1522_v58 = vor.u32 %v2014_v53, %v1521_v52  ;;  %v1449_v61 = vld [vmem:[#allocation4 + $0xa0] sm:$0xf]  ;;  %v1996_v63 = vld [vmem:[#allocation4 + $0xa4] sm:$0xf0]  ;;  %v1386_v4 = vor.u32 %v1980_v60, %v1385_v59 }
  0x25   :  { %908 = vmatpush.bf16.msra.mxu0 %v1402_v44  ;;  %v1586_v62 = vor.u32 %v2030_v55, %v1585_v54  ;;  %v1513_v0 = vld [vmem:[#allocation4 + $0x120] sm:$0xf]  ;;  %v2012_v1 = vld [vmem:[#allocation4 + $0x124] sm:$0xf0]  ;;  %v1450_v5 = vor.u32 %v1996_v63, %v1449_v61  ;;  %v1377_v7 = vld [vmem:[#allocation4 + $0x10] sm:$0xf] }
  0x26   :  { %921 = vmatpush.bf16.msra.mxu1 %v1466_v45  ;;  %v1577_v2 = vld [vmem:[#allocation4 + $0x1a0] sm:$0xf]  ;;  %v2028_v3 = vld [vmem:[#allocation4 + $0x1a4] sm:$0xf0]  ;;  %v1514_v6 = vor.u32 %v2012_v1, %v1513_v0  ;;  %v1978_v8 = vld [vmem:[#allocation4 + $0x14] sm:$0xf0] }
  0x27   :  { %934 = vmatpush.bf16.msra.mxu2 %v1530_v46  ;;  %v1441_v9 = vld [vmem:[#allocation4 + $0x90] sm:$0xf]  ;;  %v1578_v10 = vor.u32 %v2028_v3, %v1577_v2  ;;  %v1994_v11 = vld [vmem:[#allocation4 + $0x94] sm:$0xf0]  ;;  %v1378_v16 = vor.u32 %v1978_v8, %v1377_v7  ;;  %v1369_v17 = vld [vmem:[#allocation4] sm:$0xf] }
  0x28   :  { %947 = vmatpush.bf16.msra.mxu3 %v1594_v50  ;;  %v1505_v12 = vld [vmem:[#allocation4 + $0x110] sm:$0xf]  ;;  %v2010_v13 = vld [vmem:[#allocation4 + $0x114] sm:$0xf0]  ;;  %v1976_v18 = vld [vmem:[#allocation4 + $0x4] sm:$0xf0]  ;;  %v1442_v19 = vor.u32 %v1994_v11, %v1441_v9 }
  0x29   :  { %909 = vmatpush.bf16.msra.mxu0 %v1394_v56  ;;  %v1569_v14 = vld [vmem:[#allocation4 + $0x190] sm:$0xf]  ;;  %v2026_v15 = vld [vmem:[#allocation4 + $0x194] sm:$0xf0]  ;;  %v1506_v20 = vor.u32 %v2010_v13, %v1505_v12  ;;  %v1433_v21 = vld [vmem:[#allocation4 + $0x80] sm:$0xf]  ;;  %v1370_v31 = vor.u32 %v1976_v18, %v1369_v17 }
  0x2a   :  { %922 = vmatpush.bf16.msra.mxu1 %v1458_v57  ;;  %v1992_v22 = vld [vmem:[#allocation4 + $0x84] sm:$0xf0]  ;;  %v1497_v23 = vld [vmem:[#allocation4 + $0x100] sm:$0xf]  ;;  %v1570_v24 = vor.u32 %v2026_v15, %v1569_v14  ;;  %v1681_v28 = vld [vmem:[#allocation4 + $0x270] sm:$0xf] }
  0x2b   :  { %935 = vmatpush.bf16.msra.mxu2 %v1522_v58  ;;  %v2008_v25 = vld [vmem:[#allocation4 + $0x104] sm:$0xf0]  ;;  %v1561_v26 = vld [vmem:[#allocation4 + $0x180] sm:$0xf]  ;;  %v2054_v29 = vld [vmem:[#allocation4 + $0x274] sm:$0xf0]  ;;  %v1434_v35 = vor.u32 %v1992_v22, %v1433_v21 }
  0x2c   :  { %948 = vmatpush.bf16.msra.mxu3 %v1586_v62  ;;  %v2024_v27 = vld [vmem:[#allocation4 + $0x184] sm:$0xf0]  ;;  %v1745_v30 = vld [vmem:[#allocation4 + $0x2f0] sm:$0xf]  ;;  %v2070_v32 = vld [vmem:[#allocation4 + $0x2f4] sm:$0xf0]  ;;  %v1498_v36 = vor.u32 %v2008_v25, %v1497_v23  ;;  %v1682_v40 = vor.u32 %v2054_v29, %v1681_v28 }
  0x2d   :  { %910 = vmatpush.bf16.msra.mxu0 %v1386_v4  ;;  %v1809_v33 = vld [vmem:[#allocation4 + $0x370] sm:$0xf]  ;;  %v2086_v34 = vld [vmem:[#allocation4 + $0x374] sm:$0xf0]  ;;  %v1562_v39 = vor.u32 %v2024_v27, %v1561_v26  ;;  %v1746_v41 = vor.u32 %v2070_v32, %v1745_v30  ;;  %v1673_v43 = vld [vmem:[#allocation4 + $0x260] sm:$0xf] }
  0x2e   :  { %923 = vmatpush.bf16.msra.mxu1 %v1450_v5  ;;  %v1873_v37 = vld [vmem:[#allocation4 + $0x3f0] sm:$0xf]  ;;  %v2102_v38 = vld [vmem:[#allocation4 + $0x3f4] sm:$0xf0]  ;;  %v1810_v42 = vor.u32 %v2086_v34, %v1809_v33  ;;  %v2052_v44 = vld [vmem:[#allocation4 + $0x264] sm:$0xf0] }
  0x2f   :  { %936 = vmatpush.bf16.msra.mxu2 %v1514_v6  ;;  %v1737_v45 = vld [vmem:[#allocation4 + $0x2e0] sm:$0xf]  ;;  %v1874_v46 = vor.u32 %v2102_v38, %v1873_v37  ;;  %v2068_v47 = vld [vmem:[#allocation4 + $0x2e4] sm:$0xf0]  ;;  %v100_v52 = vld [vmem:[#allocation2] sm:$0xff]  ;;  %v1674_v53 = vor.u32 %v2052_v44, %v1673_v43 }
  0x30   :  { %949 = vmatpush.bf16.msra.mxu3 %v1578_v10  ;;  %v1801_v48 = vld [vmem:[#allocation4 + $0x360] sm:$0xf]  ;;  %v2084_v49 = vld [vmem:[#allocation4 + $0x364] sm:$0xf0]  ;;  %104 = vst [vmem:[#allocation1] ss:$4 sm:$0xff] %v100_v52  ;;  %v1738_v54 = vor.u32 %v2068_v47, %v1737_v45 }
  0x31   :  { %911 = vmatpush.bf16.msra.mxu0 %v1378_v16  ;;  %v1865_v50 = vld [vmem:[#allocation4 + $0x3e0] sm:$0xf]  ;;  %v2100_v51 = vld [vmem:[#allocation4 + $0x3e4] sm:$0xf0]  ;;  %v1802_v55 = vor.u32 %v2084_v49, %v1801_v48  ;;  %v1665_v56 = vld [vmem:[#allocation4 + $0x250] sm:$0xf] }
  0x32   :  { %924 = vmatpush.bf16.msra.mxu1 %v1442_v19  ;;  %v2050_v57 = vld [vmem:[#allocation4 + $0x254] sm:$0xf0]  ;;  %v1729_v58 = vld [vmem:[#allocation4 + $0x2d0] sm:$0xf]  ;;  %v1866_v59 = vor.u32 %v2100_v51, %v1865_v50  ;;  %v1657_v2 = vld [vmem:[#allocation4 + $0x240] sm:$0xf] }
  0x33   :  { %937 = vmatpush.bf16.msra.mxu2 %v1506_v20  ;;  %v2066_v60 = vld [vmem:[#allocation4 + $0x2d4] sm:$0xf0]  ;;  %v1793_v61 = vld [vmem:[#allocation4 + $0x350] sm:$0xf]  ;;  %v1666_v1 = vor.u32 %v2050_v57, %v1665_v56  ;;  %v2048_v3 = vld [vmem:[#allocation4 + $0x244] sm:$0xf0] }
  0x34   :  { %950 = vmatpush.bf16.msra.mxu3 %v1570_v24  ;;  %v2082_v62 = vld [vmem:[#allocation4 + $0x354] sm:$0xf0]  ;;  %v1857_v63 = vld [vmem:[#allocation4 + $0x3d0] sm:$0xf]  ;;  %v1730_v4 = vor.u32 %v2066_v60, %v1729_v58  ;;  %v1721_v6 = vld [vmem:[#allocation4 + $0x2c0] sm:$0xf]  ;;  %v1658_v15 = vor.u32 %v2048_v3, %v1657_v2 }
  0x35   :  { %912 = vmatpush.bf16.msra.mxu0 %v1370_v31  ;;  %v2098_v0 = vld [vmem:[#allocation4 + $0x3d4] sm:$0xf0]  ;;  %v1794_v5 = vor.u32 %v2082_v62, %v1793_v61  ;;  %v2064_v7 = vld [vmem:[#allocation4 + $0x2c4] sm:$0xf0]  ;;  %v1785_v8 = vld [vmem:[#allocation4 + $0x340] sm:$0xf] }
  0x36   :  { %925 = vmatpush.bf16.msra.mxu1 %v1434_v35  ;;  %v1858_v9 = vor.u32 %v2098_v0, %v1857_v63  ;;  %v2080_v10 = vld [vmem:[#allocation4 + $0x344] sm:$0xf0]  ;;  %v1849_v11 = vld [vmem:[#allocation4 + $0x3c0] sm:$0xf]  ;;  %v1722_v16 = vor.u32 %v2064_v7, %v1721_v6  ;;  %v1649_v22 = vld [vmem:[#allocation4 + $0x230] sm:$0xf] }
  0x37   :  { %938 = vmatpush.bf16.msra.mxu2 %v1498_v36  ;;  %v2096_v12 = vld [vmem:[#allocation4 + $0x3c4] sm:$0xf0]  ;;  %v109_v13 = vld.sshfl [vmem:[#allocation1 + $0x10] sm:$0xff pattern:$0x73625140]  ;;  %v1786_v21 = vor.u32 %v2080_v10, %v1785_v8 }
  0x38   :  { %951 = vmatpush.bf16.msra.mxu3 %v1562_v39  ;;  %v107_v14 = vld.sshfl [vmem:[#allocation1] sm:$0xff pattern:$0x73625140]  ;;  %v2328_v17 = vpack.c.bf16 %v109_v13, %v109_v13  ;;  %v110_v19 = vld.sshfl [vmem:[#allocation1 + $0x18] sm:$0xff pattern:$0x73625140]  ;;  %v1850_v27 = vor.u32 %v2096_v12, %v1849_v11 }
  0x39   :  { %957 = vmatpush.bf16.msrb.mxu0 %v1682_v40  ;;  %v2330_v18 = vpack.c.bf16 %v107_v14, %v107_v14  ;;  %v108_v20 = vld.sshfl [vmem:[#allocation1 + $0x8] sm:$0xff pattern:$0x73625140]  ;;  %v2046_v23 = vld [vmem:[#allocation4 + $0x234] sm:$0xf0]  ;;  %v2332_v25 = vpack.c.bf16 %v110_v19, %v110_v19 }
  0x3a   :  { %970 = vmatpush.bf16.msrb.mxu1 %v1746_v41  ;;  %v1713_v24 = vld [vmem:[#allocation4 + $0x2b0] sm:$0xf]  ;;  %v2334_v26 = vpack.c.bf16 %v108_v20, %v108_v20  ;;  %939 = vmatmul.bf16.vlgmr.msra.gmra.mxu2 %v2328_v17  ;;  %v2062_v28 = vld [vmem:[#allocation4 + $0x2b4] sm:$0xf0]  ;;  %v1650_v33 = vor.u32 %v2046_v23, %v1649_v22  ;;  %v1641_v36 = vld [vmem:[#allocation4 + $0x220] sm:$0xf] }
  0x3b   :  { %983 = vmatpush.bf16.msrb.mxu2 %v1810_v42  ;;  %v1777_v29 = vld [vmem:[#allocation4 + $0x330] sm:$0xf]  ;;  %v2078_v30 = vld [vmem:[#allocation4 + $0x334] sm:$0xf0]  ;;  %913 = vmatmul.bf16.vlgmr.msra.gmra.mxu0 %v2330_v18  ;;  %v1714_v34 = vor.u32 %v2062_v28, %v1713_v24  ;;  %v2044_v37 = vld [vmem:[#allocation4 + $0x224] sm:$0xf0] }
  0x3c   :  { %996 = vmatpush.bf16.msrb.mxu3 %v1874_v46  ;;  %v1841_v31 = vld [vmem:[#allocation4 + $0x3b0] sm:$0xf]  ;;  %v2094_v32 = vld [vmem:[#allocation4 + $0x3b4] sm:$0xf0]  ;;  %926 = vmatmul.bf16.vlgmr.msra.gmra.mxu1 %v2334_v26  ;;  %v1778_v35 = vor.u32 %v2078_v30, %v1777_v29  ;;  %v1705_v38 = vld [vmem:[#allocation4 + $0x2a0] sm:$0xf]  ;;  %v1642_v46 = vor.u32 %v2044_v37, %v1641_v36 }
  0x3d   :  { %958 = vmatpush.bf16.msrb.mxu0 %v1674_v53  ;;  %952 = vmatmul.bf16.vlgmr.msra.gmra.mxu3 %v2332_v25  ;;  %v1842_v39 = vor.u32 %v2094_v32, %v1841_v31  ;;  %v2060_v40 = vld [vmem:[#allocation4 + $0x2a4] sm:$0xf0]  ;;  %v1769_v41 = vld [vmem:[#allocation4 + $0x320] sm:$0xf]  ;;  %v101_v45 = vld [vmem:[#allocation2 + $0x8] sm:$0xff] }
  0x3e   :  { %971 = vmatpush.bf16.msrb.mxu1 %v1738_v54  ;;  %v2076_v42 = vld [vmem:[#allocation4 + $0x324] sm:$0xf0]  ;;  %v1833_v43 = vld [vmem:[#allocation4 + $0x3a0] sm:$0xf]  ;;  %106 = vst [vmem:[#allocation1 + $0x20] ss:$4 sm:$0xff] %v101_v45  ;;  %v1706_v47 = vor.u32 %v2060_v40, %v1705_v38 }
  0x3f   :  { %984 = vmatpush.bf16.msrb.mxu2 %v1802_v55  ;;  %v2092_v44 = vld [vmem:[#allocation4 + $0x3a4] sm:$0xf0]  ;;  %v1770_v48 = vor.u32 %v2076_v42, %v1769_v41  ;;  %v1633_v49 = vld [vmem:[#allocation4 + $0x210] sm:$0xf]  ;;  %v2042_v50 = vld [vmem:[#allocation4 + $0x214] sm:$0xf0] }
  0x40   :  { %997 = vmatpush.bf16.msrb.mxu3 %v1866_v59  ;;  %v1697_v51 = vld [vmem:[#allocation4 + $0x290] sm:$0xf]  ;;  %v1834_v52 = vor.u32 %v2092_v44, %v1833_v43  ;;  %v2058_v53 = vld [vmem:[#allocation4 + $0x294] sm:$0xf0]  ;;  %v1625_v58 = vld [vmem:[#allocation4 + $0x200] sm:$0xf]  ;;  %v1634_v59 = vor.u32 %v2042_v50, %v1633_v49 }
  0x41   :  { %959 = vmatpush.bf16.msrb.mxu0 %v1666_v1  ;;  %v1761_v54 = vld [vmem:[#allocation4 + $0x310] sm:$0xf]  ;;  %v2074_v55 = vld [vmem:[#allocation4 + $0x314] sm:$0xf0]  ;;  %v2040_v60 = vld [vmem:[#allocation4 + $0x204] sm:$0xf0]  ;;  %v1698_v63 = vor.u32 %v2058_v53, %v1697_v51 }
  0x42   :  { %972 = vmatpush.bf16.msrb.mxu1 %v1730_v4  ;;  %v1825_v56 = vld [vmem:[#allocation4 + $0x390] sm:$0xf]  ;;  %v2090_v57 = vld [vmem:[#allocation4 + $0x394] sm:$0xf0]  ;;  %v1689_v61 = vld [vmem:[#allocation4 + $0x280] sm:$0xf]  ;;  %v1762_v0 = vor.u32 %v2074_v55, %v1761_v54  ;;  %v1626_v11 = vor.u32 %v2040_v60, %v1625_v58 }
  0x43   :  { %985 = vmatpush.bf16.msrb.mxu2 %v1794_v5  ;;  %v2056_v62 = vld [vmem:[#allocation4 + $0x284] sm:$0xf0]  ;;  %v1753_v1 = vld [vmem:[#allocation4 + $0x300] sm:$0xf]  ;;  %v1826_v4 = vor.u32 %v2090_v57, %v1825_v56  ;;  %v1989_v6 = vld [vmem:[#allocation4 + $0x74] sm:$0xf] }
  0x44   :  { %998 = vmatpush.bf16.msrb.mxu3 %v1858_v9  ;;  %v2072_v2 = vld [vmem:[#allocation4 + $0x304] sm:$0xf0]  ;;  %v1817_v3 = vld [vmem:[#allocation4 + $0x380] sm:$0xf]  ;;  %v1427_v7 = vld [vmem:[#allocation4 + $0x78] sm:$0xf0] }
  0x45   :  { %960 = vmatpush.bf16.msrb.mxu0 %v1658_v15  ;;  %v2088_v5 = vld [vmem:[#allocation4 + $0x384] sm:$0xf0]  ;;  %v2005_v8 = vld [vmem:[#allocation4 + $0xf4] sm:$0xf]  ;;  %v1491_v9 = vld [vmem:[#allocation4 + $0xf8] sm:$0xf0]  ;;  %v1690_v15 = vor.u32 %v2056_v62, %v1689_v61  ;;  %v1430_v23 = vor.u32 %v1989_v6, %v1427_v7 }
  0x46   :  { %973 = vmatpush.bf16.msrb.mxu1 %v1722_v16  ;;  %v2021_v10 = vld [vmem:[#allocation4 + $0x174] sm:$0xf]  ;;  %v1555_v12 = vld [vmem:[#allocation4 + $0x178] sm:$0xf0]  ;;  %v1754_v16 = vor.u32 %v2072_v2, %v1753_v1  ;;  %v1987_v20 = vld [vmem:[#allocation4 + $0x64] sm:$0xf]  ;;  %v1818_v22 = vor.u32 %v2088_v5, %v1817_v3  ;;  %v1494_v28 = vor.u32 %v2005_v8, %v1491_v9 }
  0x47   :  { %986 = vmatpush.bf16.msrb.mxu2 %v1786_v21  ;;  %v2037_v13 = vld [vmem:[#allocation4 + $0x1f4] sm:$0xf]  ;;  %v1619_v14 = vld [vmem:[#allocation4 + $0x1f8] sm:$0xf0]  ;;  %v1419_v21 = vld [vmem:[#allocation4 + $0x68] sm:$0xf0]  ;;  %v1558_v29 = vor.u32 %v2021_v10, %v1555_v12 }
  0x48   :  { %999 = vmatpush.bf16.msrb.mxu3 %v1850_v27  ;;  %v113_v19 = vld.sshfl [vmem:[#allocation1 + $0x30] sm:$0xff pattern:$0x73625140]  ;;  %v111_v24 = vld.sshfl [vmem:[#allocation1 + $0x20] sm:$0xff pattern:$0x73625140]  ;;  %v1622_v32 = vor.u32 %v2037_v13, %v1619_v14  ;;  %v1422_v41 = vor.u32 %v1987_v20, %v1419_v21 }
  0x49   :  { %961 = vmatpush.bf16.msrb.mxu0 %v1650_v33  ;;  %v114_v27 = vld.sshfl [vmem:[#allocation1 + $0x38] sm:$0xff pattern:$0x73625140]  ;;  %v112_v31 = vld.sshfl [vmem:[#allocation1 + $0x28] sm:$0xff pattern:$0x73625140]  ;;  %v2340_v33 = vpack.c.bf16 %v113_v19, %v113_v19  ;;  %v2342_v37 = vpack.c.bf16 %v111_v24, %v111_v24 }
  0x4a   :  { %974 = vmatpush.bf16.msrb.mxu1 %v1714_v34  ;;  %v2003_v30 = vld [vmem:[#allocation4 + $0xe4] sm:$0xf]  ;;  %v1483_v34 = vld [vmem:[#allocation4 + $0xe8] sm:$0xf0]  ;;  %v2344_v38 = vpack.c.bf16 %v114_v27, %v114_v27  ;;  %v2346_v42 = vpack.c.bf16 %v112_v31, %v112_v31  ;;  %v1985_v45 = vld [vmem:[#allocation4 + $0x54] sm:$0xf] }
  0x4b   :  { %987 = vmatpush.bf16.msrb.mxu2 %v1778_v35  ;;  %v2019_v35 = vld [vmem:[#allocation4 + $0x164] sm:$0xf]  ;;  %v1547_v36 = vld [vmem:[#allocation4 + $0x168] sm:$0xf0]  ;;  %v1486_v43 = vor.u32 %v2003_v30, %v1483_v34  ;;  %v1475_v49 = vld [vmem:[#allocation4 + $0xd8] sm:$0xf0] }
  0x4c   :  { %1000 = vmatpush.bf16.msrb.mxu3 %v1842_v39  ;;  %v2035_v39 = vld [vmem:[#allocation4 + $0x1e4] sm:$0xf]  ;;  %v1611_v40 = vld [vmem:[#allocation4 + $0x1e8] sm:$0xf0]  ;;  %v1550_v44 = vor.u32 %v2019_v35, %v1547_v36  ;;  %v2017_v50 = vld [vmem:[#allocation4 + $0x154] sm:$0xf] }
  0x4d   :  { %962 = vmatpush.bf16.msrb.mxu0 %v1642_v46  ;;  %v1411_v46 = vld [vmem:[#allocation4 + $0x58] sm:$0xf0]  ;;  %v1983_v57 = vld [vmem:[#allocation4 + $0x44] sm:$0xf]  ;;  %v1403_v58 = vld [vmem:[#allocation4 + $0x48] sm:$0xf0] }
  0x4e   :  { %975 = vmatpush.bf16.msrb.mxu1 %v1706_v47  ;;  %v2001_v47 = vld [vmem:[#allocation4 + $0xd4] sm:$0xf]  ;;  %v1539_v51 = vld [vmem:[#allocation4 + $0x158] sm:$0xf0]  ;;  %v1414_v54 = vor.u32 %v1985_v45, %v1411_v46  ;;  %v1467_v61 = vld [vmem:[#allocation4 + $0xc8] sm:$0xf0]  ;;  %v1406_v2 = vor.u32 %v1983_v57, %v1403_v58 }
  0x4f   :  { %988 = vmatpush.bf16.msrb.mxu2 %v1770_v48  ;;  %v1614_v48 = vor.u32 %v2035_v39, %v1611_v40  ;;  %v1603_v53 = vld [vmem:[#allocation4 + $0x1d8] sm:$0xf0]  ;;  %v1478_v55 = vor.u32 %v2001_v47, %v1475_v49  ;;  %v1542_v56 = vor.u32 %v2017_v50, %v1539_v51  ;;  %v2015_v62 = vld [vmem:[#allocation4 + $0x144] sm:$0xf]  ;;  %v1595_v1 = vld [vmem:[#allocation4 + $0x1c8] sm:$0xf0] }
  0x50   :  { %1001 = vmatpush.bf16.msrb.mxu3 %v1834_v52  ;;  %v2033_v52 = vld [vmem:[#allocation4 + $0x1d4] sm:$0xf]  ;;  %v1395_v6 = vld [vmem:[#allocation4 + $0x38] sm:$0xf0]  ;;  %v1979_v19 = vld [vmem:[#allocation4 + $0x24] sm:$0xf] }
  0x51   :  { %963 = vmatpush.bf16.msrb.mxu0 %v1634_v59  ;;  %v1999_v59 = vld [vmem:[#allocation4 + $0xc4] sm:$0xf]  ;;  %v1606_v60 = vor.u32 %v2033_v52, %v1603_v53  ;;  %v1981_v5 = vld [vmem:[#allocation4 + $0x34] sm:$0xf]  ;;  %v1459_v9 = vld [vmem:[#allocation4 + $0xb8] sm:$0xf0] }
  0x52   :  { %976 = vmatpush.bf16.msrb.mxu1 %v1698_v63  ;;  %v1531_v63 = vld [vmem:[#allocation4 + $0x148] sm:$0xf0]  ;;  %v1470_v3 = vor.u32 %v1999_v59, %v1467_v61  ;;  %v1997_v7 = vld [vmem:[#allocation4 + $0xb4] sm:$0xf]  ;;  %v1587_v13 = vld [vmem:[#allocation4 + $0x1b8] sm:$0xf0]  ;;  %v1398_v14 = vor.u32 %v1981_v5, %v1395_v6 }
  0x53   :  { %989 = vmatpush.bf16.msrb.mxu2 %v1762_v0  ;;  %v2031_v0 = vld [vmem:[#allocation4 + $0x1c4] sm:$0xf]  ;;  %v2013_v10 = vld [vmem:[#allocation4 + $0x134] sm:$0xf]  ;;  %v1387_v20 = vld [vmem:[#allocation4 + $0x28] sm:$0xf0] }
  0x54   :  { %1002 = vmatpush.bf16.msrb.mxu3 %v1826_v4  ;;  %v1534_v4 = vor.u32 %v2015_v62, %v1531_v63  ;;  %v1598_v8 = vor.u32 %v2031_v0, %v1595_v1  ;;  %v2029_v12 = vld [vmem:[#allocation4 + $0x1b4] sm:$0xf]  ;;  %v1995_v21 = vld [vmem:[#allocation4 + $0xa4] sm:$0xf]  ;;  %v1515_v27 = vld [vmem:[#allocation4 + $0x128] sm:$0xf0]  ;;  %v1390_v30 = vor.u32 %v1979_v19, %v1387_v20 }
  0x55   :  { %964 = vmatpush.bf16.msrb.mxu0 %v1626_v11  ;;  %v1523_v11 = vld [vmem:[#allocation4 + $0x138] sm:$0xf0]  ;;  %v2011_v24 = vld [vmem:[#allocation4 + $0x124] sm:$0xf]  ;;  %v1977_v34 = vld [vmem:[#allocation4 + $0x14] sm:$0xf] }
  0x56   :  { %977 = vmatpush.bf16.msrb.mxu1 %v1690_v15  ;;  %v1462_v15 = vor.u32 %v1997_v7, %v1459_v9  ;;  %v1379_v35 = vld [vmem:[#allocation4 + $0x18] sm:$0xf0]  ;;  %v1993_v36 = vld [vmem:[#allocation4 + $0x94] sm:$0xf]  ;;  %v1975_v47 = vld [vmem:[#allocation4 + $0x4] sm:$0xf] }
  0x57   :  { %990 = vmatpush.bf16.msrb.mxu2 %v1754_v16  ;;  %v1526_v16 = vor.u32 %v2013_v10, %v1523_v11  ;;  %v1443_v40 = vld [vmem:[#allocation4 + $0x98] sm:$0xf0]  ;;  %v1382_v46 = vor.u32 %v1977_v34, %v1379_v35  ;;  %v1991_v51 = vld [vmem:[#allocation4 + $0x84] sm:$0xf]  ;;  %v1435_v52 = vld [vmem:[#allocation4 + $0x88] sm:$0xf0] }
  0x58   :  { %1003 = vmatpush.bf16.msrb.mxu3 %v1818_v22  ;;  %965 = vmatmul.bf16.vlgmr.msrb.gmra.mxu0 %v2342_v37  ;;  %v1590_v22 = vor.u32 %v2029_v12, %v1587_v13  ;;  %v1571_v45 = vld [vmem:[#allocation4 + $0x198] sm:$0xf0]  ;;  %v1446_v49 = vor.u32 %v1993_v36, %v1443_v40  ;;  %v2007_v53 = vld [vmem:[#allocation4 + $0x104] sm:$0xf]  ;;  %v1563_v57 = vld [vmem:[#allocation4 + $0x188] sm:$0xf0]  ;;  %v1438_v1 = vor.u32 %v1991_v51, %v1435_v52 }
  0x59   :  { %1009 = vmatpush.bf16.msra.mxu0 %v1430_v23  ;;  %978 = vmatmul.bf16.vlgmr.msrb.gmra.mxu1 %v2346_v42  ;;  %v1451_v23 = vld [vmem:[#allocation4 + $0xa8] sm:$0xf0]  ;;  %v2053_v58 = vld [vmem:[#allocation4 + $0x274] sm:$0xf]  ;;  %v1683_v59 = vld [vmem:[#allocation4 + $0x278] sm:$0xf0] }
  0x5a   :  { %1022 = vmatpush.bf16.msra.mxu1 %v1494_v28  ;;  %991 = vmatmul.bf16.vlgmr.msrb.gmra.mxu2 %v2340_v33  ;;  %v2027_v28 = vld [vmem:[#allocation4 + $0x1a4] sm:$0xf]  ;;  %v1454_v31 = vor.u32 %v1995_v21, %v1451_v23  ;;  %v1747_v62 = vld [vmem:[#allocation4 + $0x2f8] sm:$0xf0]  ;;  %v2085_v63 = vld [vmem:[#allocation4 + $0x374] sm:$0xf]  ;;  %v1686_v6 = vor.u32 %v2053_v58, %v1683_v59 }
  0x5b   :  { %1035 = vmatpush.bf16.msra.mxu2 %v1558_v29  ;;  %1004 = vmatmul.bf16.vlgmr.msrb.gmra.mxu3 %v2344_v38  ;;  %v1579_v29 = vld [vmem:[#allocation4 + $0x1a8] sm:$0xf0]  ;;  %v1811_v0 = vld [vmem:[#allocation4 + $0x378] sm:$0xf0]  ;;  %v2051_v7 = vld [vmem:[#allocation4 + $0x264] sm:$0xf] }
  0x5c   :  { %1048 = vmatpush.bf16.msra.mxu3 %v1622_v32  ;;  %v1518_v32 = vor.u32 %v2011_v24, %v1515_v27  ;;  %v1582_v39 = vor.u32 %v2027_v28, %v1579_v29  ;;  %v1814_v10 = vor.u32 %v2085_v63, %v1811_v0  ;;  %v2067_v11 = vld [vmem:[#allocation4 + $0x2e4] sm:$0xf]  ;;  %v1739_v12 = vld [vmem:[#allocation4 + $0x2e8] sm:$0xf0]  ;;  %v2049_v23 = vld [vmem:[#allocation4 + $0x254] sm:$0xf] }
  0x5d   :  { %1010 = vmatpush.bf16.msra.mxu0 %v1422_v41  ;;  %v2009_v41 = vld [vmem:[#allocation4 + $0x114] sm:$0xf]  ;;  %v1867_v19 = vld [vmem:[#allocation4 + $0x3e8] sm:$0xf0]  ;;  %v1742_v21 = vor.u32 %v2067_v11, %v1739_v12  ;;  %v1667_v24 = vld [vmem:[#allocation4 + $0x258] sm:$0xf0] }
  0x5e   :  { %1023 = vmatpush.bf16.msra.mxu1 %v1486_v43  ;;  %v1507_v43 = vld [vmem:[#allocation4 + $0x118] sm:$0xf0]  ;;  %v2065_v27 = vld [vmem:[#allocation4 + $0x2d4] sm:$0xf]  ;;  %v1670_v35 = vor.u32 %v2049_v23, %v1667_v24  ;;  %v2047_v40 = vld [vmem:[#allocation4 + $0x244] sm:$0xf] }
  0x5f   :  { %1036 = vmatpush.bf16.msra.mxu2 %v1550_v44  ;;  %v2025_v44 = vld [vmem:[#allocation4 + $0x194] sm:$0xf]  ;;  %v1510_v50 = vor.u32 %v2009_v41, %v1507_v43  ;;  %v1731_v29 = vld [vmem:[#allocation4 + $0x2d8] sm:$0xf0]  ;;  %v1659_v41 = vld [vmem:[#allocation4 + $0x248] sm:$0xf0] }
  0x60   :  { %1049 = vmatpush.bf16.msra.mxu3 %v1614_v48  ;;  %v1371_v48 = vld [vmem:[#allocation4 + $0x8] sm:$0xf0]  ;;  %v1859_v34 = vld [vmem:[#allocation4 + $0x3d8] sm:$0xf0]  ;;  %v1734_v36 = vor.u32 %v2065_v27, %v1731_v29  ;;  %v2061_v51 = vld [vmem:[#allocation4 + $0x2b4] sm:$0xf] }
  0x61   :  { %1011 = vmatpush.bf16.msra.mxu0 %v1414_v54  ;;  %v1574_v54 = vor.u32 %v2025_v44, %v1571_v45  ;;  %v1374_v61 = vor.u32 %v1975_v47, %v1371_v48  ;;  %v1723_v44 = vld [vmem:[#allocation4 + $0x2c8] sm:$0xf0]  ;;  %v2079_v45 = vld [vmem:[#allocation4 + $0x344] sm:$0xf]  ;;  %v2057_v11 = vld [vmem:[#allocation4 + $0x294] sm:$0xf] }
  0x62   :  { %1024 = vmatpush.bf16.msra.mxu1 %v1478_v55  ;;  %v1499_v55 = vld [vmem:[#allocation4 + $0x108] sm:$0xf0]  ;;  %v2095_v47 = vld [vmem:[#allocation4 + $0x3c4] sm:$0xf] }
  0x63   :  { %1037 = vmatpush.bf16.msra.mxu2 %v1542_v56  ;;  %v2023_v56 = vld [vmem:[#allocation4 + $0x184] sm:$0xf]  ;;  %v1627_v24 = vld [vmem:[#allocation4 + $0x208] sm:$0xf0] }
  0x64   :  { %1050 = vmatpush.bf16.msra.mxu3 %v1606_v60  ;;  %v2069_v60 = vld [vmem:[#allocation4 + $0x2f4] sm:$0xf]  ;;  %v1566_v5 = vor.u32 %v2023_v56, %v1563_v57  ;;  %v1843_v57 = vld [vmem:[#allocation4 + $0x3b8] sm:$0xf0]  ;;  %v2059_v63 = vld [vmem:[#allocation4 + $0x2a4] sm:$0xf] }
  0x65   :  { %1012 = vmatpush.bf16.msra.mxu0 %v1406_v2  ;;  %v1502_v2 = vor.u32 %v2007_v53, %v1499_v55  ;;  %v1750_v9 = vor.u32 %v2069_v60, %v1747_v62  ;;  %v1715_v53 = vld [vmem:[#allocation4 + $0x2b8] sm:$0xf0]  ;;  %v2093_v56 = vld [vmem:[#allocation4 + $0x3b4] sm:$0xf]  ;;  %v1643_v62 = vld [vmem:[#allocation4 + $0x228] sm:$0xf0] }
  0x66   :  { %1025 = vmatpush.bf16.msra.mxu1 %v1470_v3  ;;  %v2101_v3 = vld [vmem:[#allocation4 + $0x3f4] sm:$0xf]  ;;  %v1779_v55 = vld [vmem:[#allocation4 + $0x338] sm:$0xf0]  ;;  %v1718_v59 = vor.u32 %v2061_v51, %v1715_v53  ;;  %v1846_v0 = vor.u32 %v2093_v56, %v1843_v57  ;;  %v2039_v23 = vld [vmem:[#allocation4 + $0x204] sm:$0xf] }
  0x67   :  { %1038 = vmatpush.bf16.msra.mxu2 %v1534_v4  ;;  %v1875_v4 = vld [vmem:[#allocation4 + $0x3f8] sm:$0xf0]  ;;  %v2055_v27 = vld [vmem:[#allocation4 + $0x284] sm:$0xf]  ;;  %v1691_v29 = vld [vmem:[#allocation4 + $0x288] sm:$0xf0] }
  0x68   :  { %1051 = vmatpush.bf16.msra.mxu3 %v1598_v8  ;;  %v1675_v8 = vld [vmem:[#allocation4 + $0x268] sm:$0xf0]  ;;  %v1878_v13 = vor.u32 %v2101_v3, %v1875_v4  ;;  %v2091_v4 = vld [vmem:[#allocation4 + $0x3a4] sm:$0xf] }
  0x69   :  { %1013 = vmatpush.bf16.msra.mxu0 %v1398_v14  ;;  %v2083_v14 = vld [vmem:[#allocation4 + $0x364] sm:$0xf]  ;;  %v1678_v20 = vor.u32 %v2051_v7, %v1675_v8  ;;  %v1771_v3 = vld [vmem:[#allocation4 + $0x328] sm:$0xf0] }
  0x6a   :  { %1026 = vmatpush.bf16.msra.mxu1 %v1462_v15  ;;  %v1803_v15 = vld [vmem:[#allocation4 + $0x368] sm:$0xf0] }
  0x6b   :  { %1039 = vmatpush.bf16.msra.mxu2 %v1526_v16  ;;  %v2099_v16 = vld [vmem:[#allocation4 + $0x3e4] sm:$0xf] }
  0x6c   :  { %1052 = vmatpush.bf16.msra.mxu3 %v1590_v22  ;;  %v1806_v22 = vor.u32 %v2083_v14, %v1803_v15  ;;  %v1870_v28 = vor.u32 %v2099_v16, %v1867_v19  ;;  %v2073_v14 = vld [vmem:[#allocation4 + $0x314] sm:$0xf]  ;;  %v1763_v15 = vld [vmem:[#allocation4 + $0x318] sm:$0xf0] }
  0x6d   :  { %1014 = vmatpush.bf16.msra.mxu0 %v1390_v30  ;;  %v2081_v30 = vld [vmem:[#allocation4 + $0x354] sm:$0xf]  ;;  %v1827_v19 = vld [vmem:[#allocation4 + $0x398] sm:$0xf0] }
  0x6e   :  { %1027 = vmatpush.bf16.msra.mxu1 %v1454_v31  ;;  %v1795_v31 = vld [vmem:[#allocation4 + $0x358] sm:$0xf0]  ;;  %v2089_v16 = vld [vmem:[#allocation4 + $0x394] sm:$0xf] }
  0x6f   :  { %1040 = vmatpush.bf16.msra.mxu2 %v1518_v32  ;;  %v2097_v32 = vld [vmem:[#allocation4 + $0x3d4] sm:$0xf] }
  0x70   :  { %1053 = vmatpush.bf16.msra.mxu3 %v1582_v39  ;;  %v1798_v39 = vor.u32 %v2081_v30, %v1795_v31  ;;  %v1862_v43 = vor.u32 %v2097_v32, %v1859_v34  ;;  %v2071_v30 = vld [vmem:[#allocation4 + $0x304] sm:$0xf]  ;;  %v1755_v31 = vld [vmem:[#allocation4 + $0x308] sm:$0xf0] }
  0x71   :  { %1015 = vmatpush.bf16.msra.mxu0 %v1382_v46  ;;  %v1787_v46 = vld [vmem:[#allocation4 + $0x348] sm:$0xf0]  ;;  %v2087_v32 = vld [vmem:[#allocation4 + $0x384] sm:$0xf] }
  0x72   :  { %1028 = vmatpush.bf16.msra.mxu1 %v1446_v49  ;;  %v2045_v49 = vld [vmem:[#allocation4 + $0x234] sm:$0xf]  ;;  %v1819_v34 = vld [vmem:[#allocation4 + $0x388] sm:$0xf0] }
  0x73   :  { %1041 = vmatpush.bf16.msra.mxu2 %v1510_v50  ;;  %v1651_v50 = vld [vmem:[#allocation4 + $0x238] sm:$0xf0] }
  0x74   :  { %1054 = vmatpush.bf16.msra.mxu3 %v1574_v54  ;;  %v2077_v54 = vld [vmem:[#allocation4 + $0x334] sm:$0xf]  ;;  %v1654_v58 = vor.u32 %v2045_v49, %v1651_v50 }
  0x75   :  { %1016 = vmatpush.bf16.msra.mxu0 %v1374_v61  ;;  %v1782_v60 = vor.u32 %v2077_v54, %v1779_v55  ;;  %v2043_v61 = vld [vmem:[#allocation4 + $0x224] sm:$0xf] }
  0x76   :  { %1029 = vmatpush.bf16.msra.mxu1 %v1438_v1  ;;  %v1707_v1 = vld [vmem:[#allocation4 + $0x2a8] sm:$0xf0] }
  0x77   :  { %1042 = vmatpush.bf16.msra.mxu2 %v1502_v2  ;;  %v2075_v2 = vld [vmem:[#allocation4 + $0x324] sm:$0xf]  ;;  %v1710_v7 = vor.u32 %v2059_v63, %v1707_v1  ;;  %v2118_v63 = vld [vmem:[#allocation7 + $0x78] sm:$0xff] }
  0x78   :  { %1055 = vmatpush.bf16.msra.mxu3 %v1566_v5  ;;  %1017 = vmatmul.bf16.vlgmr.msra.gmra.mxu0 %v2330_v18  ;;  %v1851_v18 = vld [vmem:[#allocation4 + $0x3c8] sm:$0xf0]  ;;  %v1774_v8 = vor.u32 %v2075_v2, %v1771_v3  ;;  %v2117_v2 = vld [vmem:[#allocation7 + $0x70] sm:$0xff] }
  0x79   :  { %1061 = vmatpush.bf16.msrb.mxu0 %v1686_v6  ;;  %1030 = vmatmul.bf16.vlgmr.msra.gmra.mxu1 %v2334_v26  ;;  %v1790_v26 = vor.u32 %v2079_v45, %v1787_v46  ;;  %v1854_v52 = vor.u32 %v2095_v47, %v1851_v18  ;;  %v1835_v5 = vld [vmem:[#allocation4 + $0x3a8] sm:$0xf0]  ;;  %v1646_v6 = vor.u32 %v2043_v61, %v1643_v62  ;;  %v2106_v45 = vld [vmem:[#allocation7 + $0x18] sm:$0xff]  ;;  %v2105_v46 = vld [vmem:[#allocation7 + $0x10] sm:$0xff] }
  0x7a   :  { %1074 = vmatpush.bf16.msrb.mxu1 %v1750_v9  ;;  %1043 = vmatmul.bf16.vlgmr.msra.gmra.mxu2 %v2328_v17  ;;  %v2063_v17 = vld [vmem:[#allocation4 + $0x2c4] sm:$0xf]  ;;  %v2041_v9 = vld [vmem:[#allocation4 + $0x214] sm:$0xf]  ;;  %v1838_v12 = vor.u32 %v2091_v4, %v1835_v5  ;;  %v2104_v47 = vld [vmem:[#allocation7 + $0x8] sm:$0xff] }
  0x7b   :  { %1087 = vmatpush.bf16.msrb.mxu2 %v1814_v10  ;;  %1056 = vmatmul.bf16.vlgmr.msra.gmra.mxu3 %v2332_v25  ;;  %v1662_v25 = vor.u32 %v2047_v40, %v1659_v41  ;;  %v1726_v48 = vor.u32 %v2063_v17, %v1723_v44  ;;  %v1635_v10 = vld [vmem:[#allocation4 + $0x218] sm:$0xf0]  ;;  %v1822_v40 = vor.u32 %v2087_v32, %v1819_v34  ;;  %v2109_v17 = vld [vmem:[#allocation7 + $0x30] sm:$0xff]  ;;  %v2107_v44 = vld [vmem:[#allocation7 + $0x20] sm:$0xff] }
  0x7c   :  { %1100 = vmatpush.bf16.msrb.mxu3 %v1878_v13  ;;  %v1699_v13 = vld [vmem:[#allocation4 + $0x298] sm:$0xf0]  ;;  %v259_v18 = vld [vmem:[#allocation6] sm:$0x3] }
  0x7d   :  { %1062 = vmatpush.bf16.msrb.mxu0 %v1678_v20  ;;  %v1638_v20 = vor.u32 %v2041_v9, %v1635_v10  ;;  %v2110_v41 = vld [vmem:[#allocation7 + $0x38] sm:$0xff]  ;;  %v2115_v9 = vld [vmem:[#allocation7 + $0x60] sm:$0xff] }
  0x7e   :  { %1075 = vmatpush.bf16.msrb.mxu1 %v1742_v21  ;;  %v1702_v21 = vor.u32 %v2057_v11, %v1699_v13  ;;  %v2114_v10 = vld [vmem:[#allocation7 + $0x58] sm:$0xff]  ;;  %v2113_v11 = vld [vmem:[#allocation7 + $0x50] sm:$0xff] }
  0x7f   :  { %1088 = vmatpush.bf16.msrb.mxu2 %v1806_v22  ;;  %v1766_v22 = vor.u32 %v2073_v14, %v1763_v15  ;;  %v2112_v14 = vld [vmem:[#allocation7 + $0x48] sm:$0xff] }
  0x80   :  { %1101 = vmatpush.bf16.msrb.mxu3 %v1870_v28  ;;  %v1830_v28 = vor.u32 %v2089_v16, %v1827_v19 }
  0x81   :  { %1063 = vmatpush.bf16.msrb.mxu0 %v1670_v35  ;;  %v1630_v35 = vor.u32 %v2039_v23, %v1627_v24 }
  0x82   :  { %1076 = vmatpush.bf16.msrb.mxu1 %v1734_v36  ;;  %v1694_v36 = vor.u32 %v2055_v27, %v1691_v29 }
  0x83   :  { %1089 = vmatpush.bf16.msrb.mxu2 %v1798_v39  ;;  %v1758_v39 = vor.u32 %v2071_v30, %v1755_v31 }
  0x84   :  { %1102 = vmatpush.bf16.msrb.mxu3 %v1862_v43  ;;  %v2108_v43 = vld [vmem:[#allocation7 + $0x28] sm:$0xff] }
  0x85   :  { %1064 = vmatpush.bf16.msrb.mxu0 %v1662_v25 }
  0x86   :  { %1077 = vmatpush.bf16.msrb.mxu1 %v1726_v48  ;;  %v261_v48 = vperm.slane %v259_v18, 0 }
  0x87   :  { %1090 = vmatpush.bf16.msrb.mxu2 %v1790_v26 }
  0x88   :  { %1103 = vmatpush.bf16.msrb.mxu3 %v1854_v52 }
  0x89   :  { %1065 = vmatpush.bf16.msrb.mxu0 %v1654_v58 }
  0x8a   :  { %1078 = vmatpush.bf16.msrb.mxu1 %v1718_v59 }
  0x8b   :  { %1091 = vmatpush.bf16.msrb.mxu2 %v1782_v60 }
  0x8c   :  { %1104 = vmatpush.bf16.msrb.mxu3 %v1846_v0 }
  0x8d   :  { %1066 = vmatpush.bf16.msrb.mxu0 %v1646_v6  ;;  %v2116_v6 = vld [vmem:[#allocation7 + $0x68] sm:$0xff] }
  0x8e   :  { %1079 = vmatpush.bf16.msrb.mxu1 %v1710_v7 }
  0x8f   :  { %1092 = vmatpush.bf16.msrb.mxu2 %v1774_v8 }
  0x90   :  { %1105 = vmatpush.bf16.msrb.mxu3 %v1838_v12 }
  0x91   :  { %1067 = vmatpush.bf16.msrb.mxu0 %v1638_v20  ;;  %v2111_v20 = vld [vmem:[#allocation7 + $0x40] sm:$0xff] }
  0x92   :  { %1080 = vmatpush.bf16.msrb.mxu1 %v1702_v21 }
  0x93   :  { %1093 = vmatpush.bf16.msrb.mxu2 %v1766_v22  ;;  %v262_v22 = vperm.slane %v259_v18, 1  ;;  %v2126_v18 = vld [vmem:[#allocation9 + $0x38] sm:$0xff] }
  0x94   :  { %1106 = vmatpush.bf16.msrb.mxu3 %v1830_v28 }
  0x95   :  { %1068 = vmatpush.bf16.msrb.mxu0 %v1630_v35 }
  0x96   :  { %1081 = vmatpush.bf16.msrb.mxu1 %v1694_v36 }
  0x97   :  { %1094 = vmatpush.bf16.msrb.mxu2 %v1758_v39 }
  0x98   :  { %1107 = vmatpush.bf16.msrb.mxu3 %v1822_v40  ;;  %1069 = vmatmul.bf16.vlgmr.msrb.gmra.mxu0 %v2342_v37 }
  0x99   :  { %1249 = vmatpush.bf16.msra.mxu0 %v2110_v41  ;;  %1082 = vmatmul.bf16.vlgmr.msrb.gmra.mxu1 %v2346_v42  ;;  %v2103_v42 = vld [vmem:[#allocation7] sm:$0xff] }
  0x9a   :  { %1095 = vmatmul.bf16.vlgmr.msrb.gmra.mxu2 %v2340_v33  ;;  %1262 = vmatpush.bf16.msra.mxu1 %v2118_v63 }
  0x9b   :  { %1108 = vmatmul.bf16.vlgmr.msrb.gmra.mxu3 %v2344_v38  ;;  %1345 = vmatpush.bf16.msra.mxu2 %v2126_v18 }
  0x9d   :  { %1250 = vmatpush.bf16.msra.mxu0 %v2109_v17 }
  0x9e   :  { %1263 = vmatpush.bf16.msra.mxu1 %v2117_v2 }
  0xa1   :  { %1251 = vmatpush.bf16.msra.mxu0 %v2108_v43 }
  0xa2   :  { %1264 = vmatpush.bf16.msra.mxu1 %v2116_v6 }
  0xa5   :  { %1252 = vmatpush.bf16.msra.mxu0 %v2107_v44 }
  0xa6   :  { %1265 = vmatpush.bf16.msra.mxu1 %v2115_v9 }
  0xa9   :  { %1253 = vmatpush.bf16.msra.mxu0 %v2106_v45 }
  0xaa   :  { %1266 = vmatpush.bf16.msra.mxu1 %v2114_v10 }
  0xad   :  { %1254 = vmatpush.bf16.msra.mxu0 %v2105_v46 }
  0xae   :  { %1267 = vmatpush.bf16.msra.mxu1 %v2113_v11 }
  0xb1   :  { %1255 = vmatpush.bf16.msra.mxu0 %v2104_v47 }
  0xb2   :  { %1268 = vmatpush.bf16.msra.mxu1 %v2112_v14 }
  0xb5   :  { %1256 = vmatpush.bf16.msra.mxu0 %v2103_v42  ;;  %v2123_v42 = vld [vmem:[#allocation9 + $0x20] sm:$0xff] }
  0xb6   :  { %1269 = vmatpush.bf16.msra.mxu1 %v2111_v20 }
  0xb8   :  { %v914_v25 = vpop.f32.mrf.mxu0 }
  0xb9   :  { %v927_v37 = vpop.f32.mrf.mxu1  ;;  %v915_v26 = vadd.f32 %v914_v25, %v261_v48  ;;  %v2125_v25 = vld [vmem:[#allocation9 + $0x30] sm:$0xff]  ;;  %v2122_v48 = vld [vmem:[#allocation9 + $0x18] sm:$0xff] }
  0xba   :  { %1346 = vmatpush.bf16.msra.mxu2 %v2125_v25 }
  0xbb   :  { %v928_v51 = vadd.f32 %v927_v37, %v915_v26  ;;  %v2124_v37 = vld [vmem:[#allocation9 + $0x28] sm:$0xff] }
  0xbd   :  { %v940_v33 = vpop.f32.mrf.mxu2 }
  0xbe   :  { %v941_v54 = vadd.f32 %v940_v33, %v928_v51  ;;  %1347 = vmatpush.bf16.msra.mxu2 %v2124_v37  ;;  %v2121_v33 = vld [vmem:[#allocation9 + $0x10] sm:$0xff]  ;;  %v2136_v51 = vld [vmem:[%s2373_s4] ss:$0 sm:$0xff] }
  0xc0   :  { %v953_v38 = vpop.f32.mrf.mxu3  ;;  %v916_v49 = vpop.f32.mrf.mxu0 }
  0xc1   :  { %v929_v50 = vpop.f32.mrf.mxu1  ;;  %v954_v55 = vadd.f32 %v953_v38, %v941_v54  ;;  %v2120_v49 = vld [vmem:[#allocation9 + $0x8] sm:$0xff] }
  0xc2   :  { %1348 = vmatpush.bf16.msra.mxu2 %v2123_v42  ;;  %v2119_v50 = vld [vmem:[#allocation9] sm:$0xff] }
  0xc5   :  { %v942_v52 = vpop.f32.mrf.mxu2 }
  0xc6   :  { %1349 = vmatpush.bf16.msra.mxu2 %v2122_v48 }
  0xc8   :  { %v955_v53 = vpop.f32.mrf.mxu3 }
  0xca   :  { %1350 = vmatpush.bf16.msra.mxu2 %v2121_v33 }
  0xce   :  { %1351 = vmatpush.bf16.msra.mxu2 %v2120_v49 }
  0xd2   :  { %1352 = vmatpush.bf16.msra.mxu2 %v2119_v50 }
  0xd5   :  { %v966_v56 = vpop.f32.mrf.mxu0 }
  0xd6   :  { %v967_v57 = vadd.f32 %v966_v56, %v954_v55  ;;  %v979_v58 = vpop.f32.mrf.mxu1 }
  0xd8   :  { %v980_v59 = vadd.f32 %v979_v58, %v967_v57  ;;  %v2137_v58 = vld [vmem:[%s2375_s6] ss:$0 sm:$0xff] }
  0xdd   :  { %v992_v60 = vpop.f32.mrf.mxu2  ;;  %v968_v1 = vpop.f32.mrf.mxu0 }
  0xde   :  { %v993_v61 = vadd.f32 %v992_v60, %v980_v59  ;;  %v1005_v62 = vpop.f32.mrf.mxu3  ;;  %v981_v3 = vpop.f32.mrf.mxu1 }
  0xe0   :  { %v1006_v0 = vadd.f32 %v1005_v62, %v993_v61 }
  0xe2   :  { %v1113_v4 = vmax.f32 %v1006_v0, 0.0 }
  0xe4   :  { %v1115_v5 = vpack.c.bf16 %v1113_v4, %v1113_v4 }
  0xe5   :  { %v994_v7 = vpop.f32.mrf.mxu2 }
  0xe6   :  { %1257 = vmatmul.bf16.vlgmr.msra.gmra.mxu0 %v1115_v5  ;;  %v1007_v8 = vpop.f32.mrf.mxu3 }
  0xf5   :  { %v1018_v12 = vpop.f32.mrf.mxu0 }
  0xf6   :  { %v1031_v13 = vpop.f32.mrf.mxu1  ;;  %v1019_v27 = vadd.f32 %v1018_v12, %v262_v22 }
  0xf8   :  { %v1032_v28 = vadd.f32 %v1031_v13, %v1019_v27 }
  0xfd   :  { %v1044_v15 = vpop.f32.mrf.mxu2  ;;  %v1020_v19 = vpop.f32.mrf.mxu0 }
  0xfe   :  { %v1057_v16 = vpop.f32.mrf.mxu3  ;;  %v1033_v21 = vpop.f32.mrf.mxu1  ;;  %v1045_v29 = vadd.f32 %v1044_v15, %v1032_v28 }
 0x100   :  { %v1058_v30 = vadd.f32 %v1057_v16, %v1045_v29 }
 0x105   :  { %v1046_v23 = vpop.f32.mrf.mxu2 }
 0x106   :  { %v1059_v24 = vpop.f32.mrf.mxu3 }
 0x115   :  { %v1070_v31 = vpop.f32.mrf.mxu0 }
 0x116   :  { %v1083_v32 = vpop.f32.mrf.mxu1  ;;  %v1071_v34 = vadd.f32 %v1070_v31, %v1058_v30 }
 0x118   :  { %v1084_v35 = vadd.f32 %v1083_v32, %v1071_v34 }
 0x11d   :  { %v1096_v36 = vpop.f32.mrf.mxu2  ;;  %v1072_v41 = vpop.f32.mrf.mxu0 }
 0x11e   :  { %v1097_v39 = vadd.f32 %v1096_v36, %v1084_v35  ;;  %v1109_v40 = vpop.f32.mrf.mxu3  ;;  %v1085_v17 = vpop.f32.mrf.mxu1 }
 0x120   :  { %v1110_v43 = vadd.f32 %v1109_v40, %v1097_v39 }
 0x122   :  { %v1114_v44 = vmax.f32 %v1110_v43, 0.0 }
 0x124   :  { %v1116_v45 = vpack.c.bf16 %v1114_v44, %v1114_v44 }
 0x125   :  { %v1098_v46 = vpop.f32.mrf.mxu2 }
 0x126   :  { %v1111_v47 = vpop.f32.mrf.mxu3  ;;  %1270 = vmatmul.bf16.vlgmr.msra.gmra.mxu1 %v1116_v45 }
 0x163   :  { %v1258_v38 = vpop.f32.mrf.mxu0 }
 0x164   :  { %v1259_v52 = vadd.f32 %v2136_v51, %v1258_v38 }
 0x16b   :  { %v1260_v26 = vpop.f32.mrf.mxu0 }
 0x1a3   :  { %v1271_v53 = vpop.f32.mrf.mxu1 }
 0x1a4   :  { %v1272_v54 = vadd.f32 %v1271_v53, %v1259_v52 }
 0x1a6   :  { %v1275_v55 = vmax.f32 %v1272_v54, 0.0 }
 0x1a8   :  { %v1276_v56 = vpack.c.bf16 %v1275_v55, %v1275_v55 }
 0x1aa   :  { %1353 = vmatmul.bf16.vlgmr.msra.gmra.mxu2 %v1276_v56 }
 0x1ab   :  { %v1273_v57 = vpop.f32.mrf.mxu1 }
 0x22d   :  { %v1354_v59 = vpop.f32.mrf.mxu2 }
 0x22e   :  { %v1355_v60 = vadd.f32 %v2137_v58, %v1354_v59 }
 0x230   :  { %v1358_v61 = vpack.c.bf16 %v1355_v60, %v1355_v60 }
 0x232   :  { %1359 = vst [vmem:[%s2376_s7] sm:$0x1] %v1358_v61 }
 0x235   :  { %v1356_v62 = vpop.f32.mrf.mxu2 }
 0x236   :  { %1364 = vsyncpa [#allocation3], 1 }
 0x237   :  { %1365 = vsyncpa [#allocation5], 1 }
 0x238   :  { %1366 = vsyncpa [#allocation8], 1 }

</bundles_post_ra>
